<compile_context>
chip_gen: v5e
topology: v5e:2x2
jax: 0.10.0
libtpu: 0.0.40
codegen_flags: <defaults>
</compile_context>

<pallas_src>
import math

import jax
import jax.numpy as jnp
from jax.experimental import pallas as pl
from jax.experimental.pallas import tpu as pltpu


def patch_embed_kernel(patches_ref, w_ref, addend_ref, out_ref):
    # patches_ref: (tile_m, K) bf16 | w_ref: (K, E_pad) bf16
    # addend_ref : (tile_m, E_pad) f32 | out_ref: (tile_m, E_pad) out_dtype
    proj = jnp.dot(patches_ref[...], w_ref[...],
                   preferred_element_type=jnp.float32)       # MXU, f32 accumulate
    out_ref[...] = (proj + addend_ref[...]).astype(out_ref.dtype)


def _pick_batch_tile(b, N, target_rows=512):
    """Pick a batch tile `bt` (need NOT divide b; the wrapper pads the batch).

    Preferences:
      * rows = bt*N is a multiple of 16 (bf16 sublane packing), falling back to
        8 (the hard (8,128) block requirement when grid > 1) if 16-alignment
        alone would exceed target_rows.
      * rows <= target_rows (VMEM budget), unless even the smallest aligned
        tile exceeds it.
      * >= 2 grid steps when b >= 2 (v7x has 2 TensorCores).
    """
    step = 16 // math.gcd(N, 16)          # smallest bt giving 16-aligned rows
    if step * N > target_rows:
        step = 8 // math.gcd(N, 8)        # fall back to 8-aligned rows
    # largest multiple of `step` whose row tile fits the budget (>= one step)
    bt = max(step, (target_rows // N) // step * step)
    # keep >= 2 grid steps when the batch allows it (v7x megacore sharding)
    if b >= 2 * step:
        bt = min(bt, max(step, (b // 2) // step * step))
    # never exceed the step-rounded-up batch
    bt = min(bt, -(-b // step) * step)
    return max(bt, step)


def prepare_patch_embedding_params(conv_w, conv_b, cls_token, positions):
    """Call-invariant parameter prep (hoisted out of the per-call path).

    Returns:
      w_mat : (K, E_pad) bf16  pre-transposed, zero-padded to a lane-dense width
      addend: (N, E_pad) f32   conv bias + positions[1:], zero-padded
      head  : (1, E)     f32   cls_token + positions[0]
    """
    E = conv_w.shape[0]
    K = conv_w.size // E
    E_pad = -(-E // 128) * 128                              # lane-dense width
    w_mat = conv_w.reshape(E, K).T.astype(jnp.bfloat16)     # (K, E)
    addend = (conv_b.reshape(1, E) + positions[1:, :]).astype(jnp.float32)
    head = (cls_token.reshape(1, E) + positions[0:1, :]).astype(jnp.float32)
    if E_pad != E:
        w_mat = jnp.pad(w_mat, ((0, 0), (0, E_pad - E)))
        addend = jnp.pad(addend, ((0, 0), (0, E_pad - E)))
    return w_mat, addend, head


def patch_embedding_apply(x, w_mat, addend, head, patch_size, *,
                          target_rows=512, out_dtype=None, addend_tile=None):
    """x: (b, C, H, W) float32 (NCHW, as PyTorch).  Returns (b, N+1, E)."""
    b, C, H, W = x.shape
    p = patch_size
    assert H % p == 0 and W % p == 0, "img dims must be divisible by patch_size"
    Hp, Wp = H // p, W // p
    N = Hp * Wp
    K = C * p * p
    E_pad = w_mat.shape[1]
    E = head.shape[1]
    assert w_mat.shape[0] == K and addend.shape == (N, E_pad)
    out_dtype = x.dtype if out_dtype is None else out_dtype

    # Stride==kernel Conv2d -> per-patch rows, batch fused into M.
    # K ordering is (C, p, p) to match the PyTorch conv weight layout.
    # allow_input_fusion on this input lets XLA fold the transpose/cast into
    # the pallas_call input path rather than round-tripping (b*N, K) via HBM.
    xp = x.reshape(b, C, Hp, p, Wp, p)
    xp = jnp.transpose(xp, (0, 2, 4, 1, 3, 5))              # (b, Hp, Wp, C, p, p)
    patches = xp.reshape(b * N, K).astype(jnp.bfloat16)     # (M, K) bf16 MXU input

    bt = _pick_batch_tile(b, N, target_rows)
    tile_m = bt * N
    grid_steps = -(-b // bt)
    m_pad = grid_steps * tile_m
    if m_pad != b * N:                                      # pad batch with zero rows
        patches = jnp.pad(patches, ((0, m_pad - b * N), (0, 0)))

    if addend_tile is None:   # callers may hoist this; it only depends on bt
        addend_tile = jnp.tile(addend, (bt, 1))             # (tile_m, E_pad) f32

    def run(single_buffer_consts):
        const_kw = ({"pipeline_mode": pl.Buffered(1)} if single_buffer_consts else {})
        wbuf = 1 if single_buffer_consts else 2
        out_isz = jnp.dtype(out_dtype).itemsize
        vmem_need = (2 * tile_m * K * 2                     # patches (2 bufs, bf16)
                     + wbuf * K * E_pad * 2                 # weight (bf16)
                     + wbuf * tile_m * E_pad * 4            # addend (f32)
                     + 2 * tile_m * E_pad * out_isz)        # out (2 bufs)
        vmem_limit = int(min(max(2 * vmem_need + (4 << 20), 16 << 20), 48 << 20))
        return pl.pallas_call(
            patch_embed_kernel,
            out_shape=jax.ShapeDtypeStruct((m_pad, E_pad), out_dtype),
            grid_spec=pltpu.PrefetchScalarGridSpec(
                num_scalar_prefetch=0,
                grid=(grid_steps,),
                in_specs=[
                    pl.BlockSpec((tile_m, K), lambda i: (i, 0)),             # M tiles
                    pl.BlockSpec((K, E_pad), lambda i: (0, 0), **const_kw),  # weight
                    pl.BlockSpec((tile_m, E_pad), lambda i: (0, 0), **const_kw),
                ],
                out_specs=pl.BlockSpec((tile_m, E_pad), lambda i: (i, 0)),
            ),
            compiler_params=pltpu.CompilerParams(
                dimension_semantics=("parallel",),
                allow_input_fusion=[True, False, False],
                vmem_limit_bytes=vmem_limit,
            ),
        )(patches, w_mat, addend_tile)

    try:
        body2d = run(single_buffer_consts=True)
    except Exception:
        # Older jax without Buffered(1) on constant blocks: default buffering.
        body2d = run(single_buffer_consts=False)

    body = body2d[: b * N, :E].reshape(b, N, E)
    # cls row: batch-invariant, computed once here instead of per grid step.
    cls_rows = jnp.broadcast_to(head.reshape(1, 1, E), (b, 1, E)).astype(out_dtype)
    return jnp.concatenate([cls_rows, body], axis=1)        # (b, N+1, E)


def patch_embedding(x, conv_w, conv_b, cls_token, positions, patch_size,
                    out_dtype=None):
    w_mat, addend, head = prepare_patch_embedding_params(
        conv_w, conv_b, cls_token, positions)
    return patch_embedding_apply(x, w_mat, addend, head, patch_size,
                                 out_dtype=out_dtype)


if __name__ == "__main__":
    # Small shapes consistent with the module: in_channels=4, patch_size=4,
    # img_size=16, emb_size=32  ->  N = (16/4)^2 = 16, output (2, 17, 32).
    b, C, H, W = 2, 4, 16, 16
    p = 4
    E = 32
    N = (H // p) * (W // p)

    key = jax.random.PRNGKey(0)
    k_x, k_w, k_b, k_cls, k_pos = jax.random.split(key, 5)

    x = jax.random.normal(k_x, (b, C, H, W), dtype=jnp.float32)
    conv_w = jax.random.normal(k_w, (E, C, p, p), dtype=jnp.float32) * 0.02
    conv_b = jax.random.normal(k_b, (E,), dtype=jnp.float32) * 0.02
    cls_token = jax.random.normal(k_cls, (1, 1, E), dtype=jnp.float32)
    positions = jax.random.normal(k_pos, (N + 1, E), dtype=jnp.float32)

    out = patch_embedding(x, conv_w, conv_b, cls_token, positions, p)
    out = jax.block_until_ready(out)
    assert out.shape == (b, N + 1, E)

    # Reference patches (same extraction as PyTorch Conv2d + Rearrange).
    xpf = x.reshape(b, C, H // p, p, W // p, p)
    xpf = jnp.transpose(xpf, (0, 2, 4, 1, 3, 5)).reshape(b, N, C * p * p)
    w_ke = conv_w.reshape(E, -1).T

    # Tight check: same bf16-input / f32-accumulate math as the kernel.
    xb = xpf.astype(jnp.bfloat16).astype(jnp.float32)
    wb = w_ke.astype(jnp.bfloat16).astype(jnp.float32)
    ref_bf16 = jnp.concatenate(
        [jnp.broadcast_to(cls_token, (b, 1, E)), xb @ wb + conv_b], axis=1) + positions
    assert jnp.allclose(out, ref_bf16, atol=1e-3, rtol=1e-3), \
        float(jnp.max(jnp.abs(out - ref_bf16)))

    # Loose check against the pure-f32 PyTorch-equivalent forward.
    # TODO(synk): bf16 MXU inputs mean the kernel is not bit-identical to the
    # f32 Conv2d path; tighten by keeping f32 matmul inputs if strict parity
    # with the reference module is required.
    ref_f32 = jnp.concatenate(
        [jnp.broadcast_to(cls_token, (b, 1, E)), xpf @ w_ke + conv_b], axis=1) + positions
    assert jnp.allclose(out, ref_f32, atol=5e-2, rtol=5e-2), \
        float(jnp.max(jnp.abs(out - ref_f32)))

    print("KERNEL_OK")
</pallas_src>

<mosaic_0001>
module attributes {stable_mosaic.version = 11 : i64} {
  func.func @patch_embed_kernel(%arg0: i32, %arg1: memref<16x64xbf16, #tpu.memory_space<vmem>>, %arg2: memref<64x128xbf16, #tpu.memory_space<vmem>>, %arg3: memref<16x128xf32, #tpu.memory_space<vmem>>, %arg4: memref<16x128xf32, #tpu.memory_space<vmem>>) attributes {dimension_semantics = [#tpu.dimension_semantics<parallel>], iteration_bounds = array<i64: 2>, scalar_prefetch = 0 : i64, scratch_operands = 0 : i64, tpu.core_type = #tpu.core_type<tc>, window_params = [{transform_indices = @transform_0, window_bounds = array<i64: 16, 64>}, {pipeline_mode = #tpu.pipeline_mode<synchronous>, transform_indices = @transform_1, window_bounds = array<i64: 64, 128>}, {pipeline_mode = #tpu.pipeline_mode<synchronous>, transform_indices = @transform_2, window_bounds = array<i64: 16, 128>}, {transform_indices = @transform_3, window_bounds = array<i64: 16, 128>}]} {
    %c0 = arith.constant 0 : index
    %c0_0 = arith.constant 0 : index
    %0 = vector.load %arg1[%c0, %c0_0] : memref<16x64xbf16, #tpu.memory_space<vmem>>, vector<16x64xbf16>
    %c0_1 = arith.constant 0 : index
    %c0_2 = arith.constant 0 : index
    %1 = vector.load %arg2[%c0_1, %c0_2] : memref<64x128xbf16, #tpu.memory_space<vmem>>, vector<64x128xbf16>
    %cst = arith.constant dense<0.000000e+00> : vector<16x128xf32>
    %2 = tpu.matmul %0, %1, %cst {dimension_numbers = #tpu.dot_dimension_numbers<[1], [0], [0], [1], [0, 0, 1, 1], [], []>} : vector<16x64xbf16>, vector<64x128xbf16>, vector<16x128xf32> -> vector<16x128xf32>
    %c0_3 = arith.constant 0 : index
    %c0_4 = arith.constant 0 : index
    %3 = vector.load %arg3[%c0_3, %c0_4] : memref<16x128xf32, #tpu.memory_space<vmem>>, vector<16x128xf32>
    %4 = arith.addf %2, %3 : vector<16x128xf32>
    %c0_5 = arith.constant 0 : index
    %c0_6 = arith.constant 0 : index
    %5 = vector.load %arg4[%c0_5, %c0_6] : memref<16x128xf32, #tpu.memory_space<vmem>>, vector<16x128xf32>
    tpu.vector_store %arg4[%c0_5, %c0_6], %4 {strides = array<i32>} : memref<16x128xf32, #tpu.memory_space<vmem>>, vector<16x128xf32>,
    return
  }
  func.func @transform_0(%arg0: i32) -> (i32, i32) {
    %c0_i32 = arith.constant 0 : i32
    %c0_i32_0 = arith.constant 0 : i32
    return %arg0, %c0_i32 : i32, i32
  }
  func.func @transform_1(%arg0: i32) -> (i32, i32) {
    %c0_i32 = arith.constant 0 : i32
    %c0_i32_0 = arith.constant 0 : i32
    %c0_i32_1 = arith.constant 0 : i32
    return %c0_i32, %c0_i32_0 : i32, i32
  }
  func.func @transform_2(%arg0: i32) -> (i32, i32) {
    %c0_i32 = arith.constant 0 : i32
    %c0_i32_0 = arith.constant 0 : i32
    %c0_i32_1 = arith.constant 0 : i32
    return %c0_i32, %c0_i32_0 : i32, i32
  }
  func.func @transform_3(%arg0: i32) -> (i32, i32) {
    %c0_i32 = arith.constant 0 : i32
    %c0_i32_0 = arith.constant 0 : i32
    return %arg0, %c0_i32 : i32, i32
  }
}

module attributes {stable_mosaic.version = 11 : i64} {
  func.func @patch_embed_kernel(%arg0: i32, %arg1: memref<16x64xbf16, #tpu.memory_space<vmem>>, %arg2: memref<64x128xbf16, #tpu.memory_space<vmem>>, %arg3: memref<16x128xf32, #tpu.memory_space<vmem>>, %arg4: memref<16x128xf32, #tpu.memory_space<vmem>>) attributes {dimension_semantics = [#tpu.dimension_semantics<parallel>], iteration_bounds = array<i64: 2>, scalar_prefetch = 0 : i64, scratch_operands = 0 : i64, tpu.core_type = #tpu.core_type<tc>, window_params = [{transform_indices = @transform_0, window_bounds = array<i64: 16, 64>}, {pipeline_mode = #tpu.pipeline_mode<synchronous>, transform_indices = @transform_1, window_bounds = array<i64: 64, 128>}, {pipeline_mode = #tpu.pipeline_mode<synchronous>, transform_indices = @transform_2, window_bounds = array<i64: 16, 128>}, {transform_indices = @transform_3, window_bounds = array<i64: 16, 128>}]} {
    %c0 = arith.constant 0 : index
    %c0_0 = arith.constant 0 : index
    %0 = vector.load %arg1[%c0, %c0_0] : memref<16x64xbf16, #tpu.memory_space<vmem>>, vector<16x64xbf16>
    %c0_1 = arith.constant 0 : index
    %c0_2 = arith.constant 0 : index
    %1 = vector.load %arg2[%c0_1, %c0_2] : memref<64x128xbf16, #tpu.memory_space<vmem>>, vector<64x128xbf16>
    %cst = arith.constant dense<0.000000e+00> : vector<16x128xf32>
    %2 = tpu.matmul %0, %1, %cst {dimension_numbers = #tpu.dot_dimension_numbers<[1], [0], [0], [1], [0, 0, 1, 1], [], []>} : vector<16x64xbf16>, vector<64x128xbf16>, vector<16x128xf32> -> vector<16x128xf32>
    %c0_3 = arith.constant 0 : index
    %c0_4 = arith.constant 0 : index
    %3 = vector.load %arg3[%c0_3, %c0_4] : memref<16x128xf32, #tpu.memory_space<vmem>>, vector<16x128xf32>
    %4 = arith.addf %2, %3 : vector<16x128xf32>
    %c0_5 = arith.constant 0 : index
    %c0_6 = arith.constant 0 : index
    %5 = vector.load %arg4[%c0_5, %c0_6] : memref<16x128xf32, #tpu.memory_space<vmem>>, vector<16x128xf32>
    tpu.vector_store %arg4[%c0_5, %c0_6], %4 {strides = array<i32>} : memref<16x128xf32, #tpu.memory_space<vmem>>, vector<16x128xf32>,
    return
  }
  func.func @transform_0(%arg0: i32) -> (i32, i32) {
    %c0_i32 = arith.constant 0 : i32
    %c0_i32_0 = arith.constant 0 : i32
    return %arg0, %c0_i32 : i32, i32
  }
  func.func @transform_1(%arg0: i32) -> (i32, i32) {
    %c0_i32 = arith.constant 0 : i32
    %c0_i32_0 = arith.constant 0 : i32
    %c0_i32_1 = arith.constant 0 : i32
    return %c0_i32, %c0_i32_0 : i32, i32
  }
  func.func @transform_2(%arg0: i32) -> (i32, i32) {
    %c0_i32 = arith.constant 0 : i32
    %c0_i32_0 = arith.constant 0 : i32
    %c0_i32_1 = arith.constant 0 : i32
    return %c0_i32, %c0_i32_0 : i32, i32
  }
  func.func @transform_3(%arg0: i32) -> (i32, i32) {
    %c0_i32 = arith.constant 0 : i32
    %c0_i32_0 = arith.constant 0 : i32
    return %arg0, %c0_i32 : i32, i32
  }
}

</mosaic_0001>

<bundles_post_ra>
// kernel: tpu_custom_call.1
= control target key start
LH: loop header
LB: loop body
LE: loop exit
PB: predicated region body
PF: predicated region fallthrough
CT: control target
= control target key end

     0   :  { %8 = vsyncpa [#allocation3], 0  ;;  %s853_s0 = inlined_call_operand.hbm [shape: bf16[32,64], index: 0, kind: input, shape index: {}]   ;;  %s854_s1 = inlined_call_operand.hbm [shape: bf16[64,128], index: 1, kind: input, shape index: {}]   ;;  %s855_s2 = inlined_call_operand.hbm [shape: f32[16,128], index: 2, kind: input, shape index: {}]   ;;  %s856_s3 = inlined_call_operand.hbm [shape: f32[32,128], index: 3, kind: output, shape index: {}]  }
   0x1   :  { %10 = vsyncpa [#allocation3 + $0x1], 0 }
   0x2   :  { %11 = vsyncpa [#allocation6], 0 }
   0x3   :  { %12 = vsyncpa [#allocation4], 0 }
   0x4   :  { %14 = vsyncpa [#allocation4 + $0x1], 0  ;;  %s705_s12 = smov 0   ;;  %s707_s13 = smov 0  }
   0x5   :  { %s709_s14 = smov 0   ;;  %s711_s15 = smov 0  }
   0x6 LB: > { %s726_s16 = sadd.s32 4294967295, %s675_s15   ;;  %s396_s17 = sadd.s32 4294967294, %s675_s15   ;;  %s675_s15 = sphi %s711_s15, %s866_s15   ;;  %s671_s14 = sphi %s709_s14, %s865_s14   ;;  %s667_s13 = sphi %s707_s13, %s864_s13   ;;  %s663_s12 = sphi %s705_s12, %s863_s12  }
   0x7   : > { %p40_p0 = scmp.ne.s32.totalorder %s667_s13, %s663_s12  ;;  %p41_p1 = scmp.eq.s32.totalorder %s726_s16, 0 }
   0x8   : > { %p106_p2 = scmp.eq.s32.totalorder %s726_s16, 1  ;;  %p112_p3 = scmp.eq.s32.totalorder %s396_s17, 1 }
   0x9   : > { %p735_p4 = por %p41_p1, %p40_p0  ;;  %p397_p5 = scmp.ge.s32.totalorder %s675_s15, 1 }
   0xa   : > { %p740_p6 = por %p112_p3, %p40_p0  ;;  %p119_p7 = scmp.lt.s32.totalorder %s675_s15, 3 }
   0xb   : > { %s130_s22 = sshll.u32 %s854_s1, 4  ;;  %s677_s24 = smov [#allocation5]   ;;  %s131_s22 = int_to_ptr.hbm [resolvable:$true] %s130_s22 }
   0xc   : > { %p748_p8 = pnand %p397_p5, %p119_p7  ;;  %s132_s25 = sshll.u32 %s677_s24, 4  ;;  %s133_s25 = int_to_ptr.vmem [resolvable:$true] %s132_s25 }
   0xd   : > { %s144_s28 = sshll.u32 %s855_s2, 4  ;;  %s678_s29 = smov 64   ;;  %s145_s28 = int_to_ptr.hbm [resolvable:$true] %s144_s28 }
   0xe   : > { %p454_p9 = pneg %p748_p8  ;;  %s679_s30 = smov 4  }
   0xf   : > { %s680_s4 = smov [#allocation7]   ;;  %s681_s6 = smov 128  }
  0x10   : > { %p455_p10 = pnand %p454_p9, %p41_p1  ;;  %s146_s5 = sshll.u32 %s680_s4, 4  ;;  %s147_s5 = int_to_ptr.vmem [resolvable:$true] %s146_s5 }
  0x11   : > { %s682_s7 = smov 8   ;;  %s764_s8 = sadd.s32 1, %s675_s15  }
  0x12   : > { %457 = dma.hbm_to_vmem [thread:$0]  (!%p455_p10), %s131_s22, 512, %s133_s25, [#allocation6], %s678_s29, %s678_s29, %s679_s30  }
  0x13   : > { %460 = dma.hbm_to_vmem [thread:$0]  (!%p455_p10), %s145_s28, 256, %s147_s5, [#allocation6], %s681_s6, %s681_s6, %s682_s7  }
  0x14   : > { %s24_s9 = ssub.s32 %s675_s15, %s764_s8  ;;  %s27_s10 = sadd.s32 1, %s671_s14 }
  0x15   : > { %p25_p12 = scmp.eq.s32.totalorder %s24_s9, 0  ;;  %p34_p13 = scmp.ne.s32.totalorder %s671_s14, %s667_s13 }
  0x16   : > { %p35_p0 = scmp.eq.s32.totalorder %s675_s15, 0  ;;  %p471_p7 = scmp.lt.s32.totalorder %s675_s15, 2 }
  0x17   : > { %s773_s11 = scalar_select %p25_p12, %s671_s14, %s27_s10  }
  0x18   : > { %p36_p3 = por %p35_p0, %p34_p13  ;;  %p777_p5 = por %p106_p2, %p34_p13 }
  0x19   : > { %s160_s20 = sand.u32 1, %s671_s14   ;;  %s435_s22 = sshll.u32 %s675_s15, 3 }
  0x1a   : > { %s401_s21 = sshll.u32 %s160_s20, 3  ;;  %s169_s26 = scalar_lea.hbm %s853_s0, %s435_s22 }
  0x1b   : > { %s164_s27 = scalar_lea.vmem [#allocation2], %s401_s21  ;;  %s170_s4 = sshll.u32 %s169_s26, 4  ;;  %s171_s4 = int_to_ptr.hbm [resolvable:$true] %s170_s4 }
  0x1c   : > { %s172_s28 = sshll.u32 %s164_s27, 4  ;;  %p787_p9 = pnand %p471_p7, %p36_p3  ;;  %s173_s28 = int_to_ptr.vmem [resolvable:$true] %s172_s28 }
  0x1d   : > { %s161_s6 = scalar_lea.sflag [#allocation3], %s160_s20  ;;  %s575_s7 = sshra.s32 %s171_s4, 4  ;;  %s576_s7 = int_to_ptr.hbm [resolvable:$true] %s575_s7 }
  0x1e   : > { %s577_s9 = scalar_lea.hbm %s576_s7, 8  ;;  %p579_p10 = pneg %p787_p9 }
  0x1f   : > { %p578_p2 = scmp.ne.s32.totalorder %s576_s7, %s577_s9  ;;  %s582_s22 = scalar_lea.hbm %s853_s0, 16 }
  0x20   : > { %p583_p0 = scmp.lt.s32.totalorder %s576_s7, %s853_s0  ;;  %p584_p3 = scmp.lt.s32.totalorder %s582_s22, %s577_s9 }
  0x21   : > { %p580_p12 = pnand %p579_p10, %p578_p2 }
  0x22   : > { %p585_p7 = por %p584_p3, %p583_p0 }
  0x23   : > { %p581_p13 = pneg %p580_p12 }
  0x25   : > { %p586_p11 = pnand %p585_p7, %p581_p13 }
  0x27   : > { %589 = shalt.err (!%p586_p11)
}
  0x28   : > { %464 = dma.hbm_to_vmem [thread:$0]  (!%p787_p9), %s171_s4, 128, %s173_s28, %s161_s6, %s678_s29, %s678_s29, %s679_s30  }
  0x29   : > { %184 = sbr.rel (%p748_p8) target bundleno = 205 (0xcd), region = 32  ;;  %s807_s20 = sand.u32 (!%p748_p8), 1, %s667_s13  }
  0x2a   : > { %s405_s26 = sshll.u32 (!%p748_p8), %s807_s20, 3  ;;  %s187_s27 = scalar_lea.sflag (!%p748_p8), [#allocation3], %s807_s20 }
  0x2b   : > { %s190_s7 = scalar_lea.vmem (!%p748_p8), [#allocation2], %s405_s26 }
  0x2e   : > { %650 = dma.done.wait (%p735_p4), %s187_s27, 128  }
  0x2f   : > { %652 = vsyncadd (%p735_p4), %s187_s27, 4294967168 }
  0x30   : > { %654 = dma.done.wait (%p41_p1), [#allocation6], 768  }
  0x31   : > { %656 = vsyncadd (%p41_p1), [#allocation6], 4294966528  ;;  %v440_v0 = vld [vmem:[#allocation5 + $0x18] sm:$0xff]  ;;  %v439_v1 = vld [vmem:[#allocation5 + $0x10] sm:$0xff]  ;;  %vm268_vm0 = vcmask 523264   ;;  %s408_s18 = sshll.u32 %s807_s20, 4 }
  0x32   : > { %276 = vmatpush.bf16.msra.mxu0 %v440_v0  ;;  %v438_v2 = vld [vmem:[#allocation5 + $0x8] sm:$0xff]  ;;  %v437_v3 = vld [vmem:[#allocation5] sm:$0xff]  ;;  %v436_v4 = vld [vmem:[%s190_s7] sm:$0xff]  ;;  %s441_s23 = sshll.u32 %s726_s16, 4  ;;  %s223_s4 = scalar_lea.vmem [#allocation8], %s408_s18 }
  0x33   : > { %v237_v5 = vld [vmem:[#allocation7] sm:$0xff]  ;;  %s300_s28 = scalar_lea.hbm %s856_s3, %s441_s23  ;;  %s301_s5 = sshll.u32 %s223_s4, 4  ;;  %v238_v8 = vld [vmem:[#allocation7 + $0x8] sm:$0xff]  ;;  %s302_s5 = int_to_ptr.vmem [resolvable:$true] %s301_s5 }
  0x34   : > { %s303_s6 = sshll.u32 %s300_s28, 4  ;;  %s289_s9 = scalar_lea.sflag [#allocation4], %s807_s20  ;;  %s304_s6 = int_to_ptr.hbm [resolvable:$true] %s303_s6 }
  0x35   : > { %s619_s10 = sshra.s32 %s304_s6, 4  ;;  %s625_s24 = scalar_lea.hbm %s856_s3, 32  ;;  %s620_s10 = int_to_ptr.hbm [resolvable:$true] %s619_s10 }
  0x36   : > { %277 = vmatpush.bf16.msra.mxu0 %v439_v1  ;;  %s621_s16 = scalar_lea.hbm %s620_s10, 16  ;;  %p626_p11 = scmp.lt.s32.totalorder %s620_s10, %s856_s3 }
  0x37   : > { %p622_p1 = scmp.ne.s32.totalorder %s620_s10, %s621_s16  ;;  %p627_p9 = scmp.lt.s32.totalorder %s625_s24, %s621_s16 }
  0x39   : > { %p623_p4 = pnand %p622_p1, %p777_p5  ;;  %p628_p2 = por %p627_p9, %p626_p11 }
  0x3a   : > { %278 = vmatpush.bf16.msra.mxu0 %v438_v2 }
  0x3b   : > { %p624_p8 = pneg %p623_p4 }
  0x3d   : > { %p629_p10 = pnand %p628_p2, %p624_p8 }
  0x3e   : > { %279 = vmatpush.bf16.msra.mxu0 %v437_v3 }
  0x41   : > { %429 = vmatmul.msk.bf16.vlgmr.msra.gmra.mxu0 %vm268_vm0, %v436_v4 }
  0xbe   : > { %v281_v6 = vpop.f32.mrf.mxu0 }
  0xbf   : > { %v282_v7 = vadd.f32 %v281_v6, %v237_v5 }
  0xc1   : > { %286 = vst [vmem:[%s223_s4] sm:$0xff] %v282_v7 }
  0xc6   : > { %v283_v9 = vpop.f32.mrf.mxu0 }
  0xc7   : > { %v284_v10 = vadd.f32 %v283_v9, %v238_v8 }
  0xc9   : > { %287 = vst [vmem:[%s223_s4 + $0x8] sm:$0xff] %v284_v10 }
  0xca   : > { %632 = shalt.err (!%p629_p10)
}
  0xcb   : > { %s683_s20 = smov 128   ;;  %s684_s27 = smov 8  }
  0xcc   : > { %452 = dma.vmem_to_hbm [thread:$0]  (%p777_p5), %s302_s5, 256, %s304_s6, %s289_s9, %s683_s20, %s683_s20, %s684_s27  }
  0xcd PF: > { %s318_s7 = sand.u32 1, %s663_s12   ;;  %p862_p12 = scmp.ge.s32.totalorder %s675_s15, 2 }
  0xce   : > { %s319_s18 = scalar_lea.sflag [#allocation4], %s318_s7 }
  0xcf   : > { %p466_p13 = pnand %p862_p12, %p740_p6 }
  0xd1   : > { %p467_p0 = pneg %p466_p13 }
  0xd3   : > { %658 = dma.done.wait (%p467_p0), %s319_s18, 256  }
  0xd4   : > { %660 = vsyncadd (%p467_p0), %s319_s18, 4294967040  ;;  %p17_p3 = scmp.ge.s32.totalorder %s764_s8, 4   ;;  %s863_s12 = smov %s667_s13 }
  0xd5   : > { %s864_s13 = smov %s671_s14  ;;  %s865_s14 = smov %s773_s11 }
  0xd6   : > { %s866_s15 = smov %s764_s8  ;;  %19 = sbr.rel (!%p17_p3) target bundleno = 6 (0x6), region = 85 }
  0xdb   :  { %325 = vsyncpa [#allocation3], 1 }
  0xdc   :  { %327 = vsyncpa [#allocation3 + $0x1], 1 }
  0xdd   :  { %328 = vsyncpa [#allocation6], 1 }
  0xde   :  { %329 = vsyncpa [#allocation4], 1 }
  0xdf   :  { %331 = vsyncpa [#allocation4 + $0x1], 1 }

// kernel: tpu_custom_call.1
= control target key start
LH: loop header
LB: loop body
LE: loop exit
PB: predicated region body
PF: predicated region fallthrough
CT: control target
= control target key end

     0   :  { %8 = vsyncpa [#allocation3], 0  ;;  %s853_s0 = inlined_call_operand.hbm [shape: bf16[32,64], index: 0, kind: input, shape index: {}]   ;;  %s854_s1 = inlined_call_operand.hbm [shape: bf16[64,128], index: 1, kind: input, shape index: {}]   ;;  %s855_s2 = inlined_call_operand.hbm [shape: f32[16,128], index: 2, kind: input, shape index: {}]   ;;  %s856_s3 = inlined_call_operand.hbm [shape: f32[32,128], index: 3, kind: output, shape index: {}]  }
   0x1   :  { %10 = vsyncpa [#allocation3 + $0x1], 0 }
   0x2   :  { %11 = vsyncpa [#allocation6], 0 }
   0x3   :  { %12 = vsyncpa [#allocation4], 0 }
   0x4   :  { %14 = vsyncpa [#allocation4 + $0x1], 0  ;;  %s705_s12 = smov 0   ;;  %s707_s13 = smov 0  }
   0x5   :  { %s709_s14 = smov 0   ;;  %s711_s15 = smov 0  }
   0x6 LB: > { %s726_s16 = sadd.s32 4294967295, %s675_s15   ;;  %s396_s17 = sadd.s32 4294967294, %s675_s15   ;;  %s675_s15 = sphi %s711_s15, %s866_s15   ;;  %s671_s14 = sphi %s709_s14, %s865_s14   ;;  %s667_s13 = sphi %s707_s13, %s864_s13   ;;  %s663_s12 = sphi %s705_s12, %s863_s12  }
   0x7   : > { %p40_p0 = scmp.ne.s32.totalorder %s667_s13, %s663_s12  ;;  %p41_p1 = scmp.eq.s32.totalorder %s726_s16, 0 }
   0x8   : > { %p106_p2 = scmp.eq.s32.totalorder %s726_s16, 1  ;;  %p112_p3 = scmp.eq.s32.totalorder %s396_s17, 1 }
   0x9   : > { %p735_p4 = por %p41_p1, %p40_p0  ;;  %p397_p5 = scmp.ge.s32.totalorder %s675_s15, 1 }
   0xa   : > { %p740_p6 = por %p112_p3, %p40_p0  ;;  %p119_p7 = scmp.lt.s32.totalorder %s675_s15, 3 }
   0xb   : > { %s130_s22 = sshll.u32 %s854_s1, 4  ;;  %s677_s24 = smov [#allocation5]   ;;  %s131_s22 = int_to_ptr.hbm [resolvable:$true] %s130_s22 }
   0xc   : > { %p748_p8 = pnand %p397_p5, %p119_p7  ;;  %s132_s25 = sshll.u32 %s677_s24, 4  ;;  %s133_s25 = int_to_ptr.vmem [resolvable:$true] %s132_s25 }
   0xd   : > { %s144_s28 = sshll.u32 %s855_s2, 4  ;;  %s678_s29 = smov 64   ;;  %s145_s28 = int_to_ptr.hbm [resolvable:$true] %s144_s28 }
   0xe   : > { %p454_p9 = pneg %p748_p8  ;;  %s679_s30 = smov 4  }
   0xf   : > { %s680_s4 = smov [#allocation7]   ;;  %s681_s6 = smov 128  }
  0x10   : > { %p455_p10 = pnand %p454_p9, %p41_p1  ;;  %s146_s5 = sshll.u32 %s680_s4, 4  ;;  %s147_s5 = int_to_ptr.vmem [resolvable:$true] %s146_s5 }
  0x11   : > { %s682_s7 = smov 8   ;;  %s764_s8 = sadd.s32 1, %s675_s15  }
  0x12   : > { %457 = dma.hbm_to_vmem [thread:$0]  (!%p455_p10), %s131_s22, 512, %s133_s25, [#allocation6], %s678_s29, %s678_s29, %s679_s30  }
  0x13   : > { %460 = dma.hbm_to_vmem [thread:$0]  (!%p455_p10), %s145_s28, 256, %s147_s5, [#allocation6], %s681_s6, %s681_s6, %s682_s7  }
  0x14   : > { %s24_s9 = ssub.s32 %s675_s15, %s764_s8  ;;  %s27_s10 = sadd.s32 1, %s671_s14 }
  0x15   : > { %p25_p12 = scmp.eq.s32.totalorder %s24_s9, 0  ;;  %p34_p13 = scmp.ne.s32.totalorder %s671_s14, %s667_s13 }
  0x16   : > { %p35_p0 = scmp.eq.s32.totalorder %s675_s15, 0  ;;  %p471_p7 = scmp.lt.s32.totalorder %s675_s15, 2 }
  0x17   : > { %s773_s11 = scalar_select %p25_p12, %s671_s14, %s27_s10  }
  0x18   : > { %p36_p3 = por %p35_p0, %p34_p13  ;;  %p777_p5 = por %p106_p2, %p34_p13 }
  0x19   : > { %s160_s20 = sand.u32 1, %s671_s14   ;;  %s435_s22 = sshll.u32 %s675_s15, 3 }
  0x1a   : > { %s401_s21 = sshll.u32 %s160_s20, 3  ;;  %s169_s26 = scalar_lea.hbm %s853_s0, %s435_s22 }
  0x1b   : > { %s164_s27 = scalar_lea.vmem [#allocation2], %s401_s21  ;;  %s170_s4 = sshll.u32 %s169_s26, 4  ;;  %s171_s4 = int_to_ptr.hbm [resolvable:$true] %s170_s4 }
  0x1c   : > { %s172_s28 = sshll.u32 %s164_s27, 4  ;;  %p787_p9 = pnand %p471_p7, %p36_p3  ;;  %s173_s28 = int_to_ptr.vmem [resolvable:$true] %s172_s28 }
  0x1d   : > { %s161_s6 = scalar_lea.sflag [#allocation3], %s160_s20  ;;  %s575_s7 = sshra.s32 %s171_s4, 4  ;;  %s576_s7 = int_to_ptr.hbm [resolvable:$true] %s575_s7 }
  0x1e   : > { %s577_s9 = scalar_lea.hbm %s576_s7, 8  ;;  %p579_p10 = pneg %p787_p9 }
  0x1f   : > { %p578_p2 = scmp.ne.s32.totalorder %s576_s7, %s577_s9  ;;  %s582_s22 = scalar_lea.hbm %s853_s0, 16 }
  0x20   : > { %p583_p0 = scmp.lt.s32.totalorder %s576_s7, %s853_s0  ;;  %p584_p3 = scmp.lt.s32.totalorder %s582_s22, %s577_s9 }
  0x21   : > { %p580_p12 = pnand %p579_p10, %p578_p2 }
  0x22   : > { %p585_p7 = por %p584_p3, %p583_p0 }
  0x23   : > { %p581_p13 = pneg %p580_p12 }
  0x25   : > { %p586_p11 = pnand %p585_p7, %p581_p13 }
  0x27   : > { %589 = shalt.err (!%p586_p11)
}
  0x28   : > { %464 = dma.hbm_to_vmem [thread:$0]  (!%p787_p9), %s171_s4, 128, %s173_s28, %s161_s6, %s678_s29, %s678_s29, %s679_s30  }
  0x29   : > { %184 = sbr.rel (%p748_p8) target bundleno = 205 (0xcd), region = 32  ;;  %s807_s20 = sand.u32 (!%p748_p8), 1, %s667_s13  }
  0x2a   : > { %s405_s26 = sshll.u32 (!%p748_p8), %s807_s20, 3  ;;  %s187_s27 = scalar_lea.sflag (!%p748_p8), [#allocation3], %s807_s20 }
  0x2b   : > { %s190_s7 = scalar_lea.vmem (!%p748_p8), [#allocation2], %s405_s26 }
  0x2e   : > { %650 = dma.done.wait (%p735_p4), %s187_s27, 128  }
  0x2f   : > { %652 = vsyncadd (%p735_p4), %s187_s27, 4294967168 }
  0x30   : > { %654 = dma.done.wait (%p41_p1), [#allocation6], 768  }
  0x31   : > { %656 = vsyncadd (%p41_p1), [#allocation6], 4294966528  ;;  %v440_v0 = vld [vmem:[#allocation5 + $0x18] sm:$0xff]  ;;  %v439_v1 = vld [vmem:[#allocation5 + $0x10] sm:$0xff]  ;;  %vm268_vm0 = vcmask 523264   ;;  %s408_s18 = sshll.u32 %s807_s20, 4 }
  0x32   : > { %276 = vmatpush.bf16.msra.mxu0 %v440_v0  ;;  %v438_v2 = vld [vmem:[#allocation5 + $0x8] sm:$0xff]  ;;  %v437_v3 = vld [vmem:[#allocation5] sm:$0xff]  ;;  %v436_v4 = vld [vmem:[%s190_s7] sm:$0xff]  ;;  %s441_s23 = sshll.u32 %s726_s16, 4  ;;  %s223_s4 = scalar_lea.vmem [#allocation8], %s408_s18 }
  0x33   : > { %v237_v5 = vld [vmem:[#allocation7] sm:$0xff]  ;;  %s300_s28 = scalar_lea.hbm %s856_s3, %s441_s23  ;;  %s301_s5 = sshll.u32 %s223_s4, 4  ;;  %v238_v8 = vld [vmem:[#allocation7 + $0x8] sm:$0xff]  ;;  %s302_s5 = int_to_ptr.vmem [resolvable:$true] %s301_s5 }
  0x34   : > { %s303_s6 = sshll.u32 %s300_s28, 4  ;;  %s289_s9 = scalar_lea.sflag [#allocation4], %s807_s20  ;;  %s304_s6 = int_to_ptr.hbm [resolvable:$true] %s303_s6 }
  0x35   : > { %s619_s10 = sshra.s32 %s304_s6, 4  ;;  %s625_s24 = scalar_lea.hbm %s856_s3, 32  ;;  %s620_s10 = int_to_ptr.hbm [resolvable:$true] %s619_s10 }
  0x36   : > { %277 = vmatpush.bf16.msra.mxu0 %v439_v1  ;;  %s621_s16 = scalar_lea.hbm %s620_s10, 16  ;;  %p626_p11 = scmp.lt.s32.totalorder %s620_s10, %s856_s3 }
  0x37   : > { %p622_p1 = scmp.ne.s32.totalorder %s620_s10, %s621_s16  ;;  %p627_p9 = scmp.lt.s32.totalorder %s625_s24, %s621_s16 }
  0x39   : > { %p623_p4 = pnand %p622_p1, %p777_p5  ;;  %p628_p2 = por %p627_p9, %p626_p11 }
  0x3a   : > { %278 = vmatpush.bf16.msra.mxu0 %v438_v2 }
  0x3b   : > { %p624_p8 = pneg %p623_p4 }
  0x3d   : > { %p629_p10 = pnand %p628_p2, %p624_p8 }
  0x3e   : > { %279 = vmatpush.bf16.msra.mxu0 %v437_v3 }
  0x41   : > { %429 = vmatmul.msk.bf16.vlgmr.msra.gmra.mxu0 %vm268_vm0, %v436_v4 }
  0xbe   : > { %v281_v6 = vpop.f32.mrf.mxu0 }
  0xbf   : > { %v282_v7 = vadd.f32 %v281_v6, %v237_v5 }
  0xc1   : > { %286 = vst [vmem:[%s223_s4] sm:$0xff] %v282_v7 }
  0xc6   : > { %v283_v9 = vpop.f32.mrf.mxu0 }
  0xc7   : > { %v284_v10 = vadd.f32 %v283_v9, %v238_v8 }
  0xc9   : > { %287 = vst [vmem:[%s223_s4 + $0x8] sm:$0xff] %v284_v10 }
  0xca   : > { %632 = shalt.err (!%p629_p10)
}
  0xcb   : > { %s683_s20 = smov 128   ;;  %s684_s27 = smov 8  }
  0xcc   : > { %452 = dma.vmem_to_hbm [thread:$0]  (%p777_p5), %s302_s5, 256, %s304_s6, %s289_s9, %s683_s20, %s683_s20, %s684_s27  }
  0xcd PF: > { %s318_s7 = sand.u32 1, %s663_s12   ;;  %p862_p12 = scmp.ge.s32.totalorder %s675_s15, 2 }
  0xce   : > { %s319_s18 = scalar_lea.sflag [#allocation4], %s318_s7 }
  0xcf   : > { %p466_p13 = pnand %p862_p12, %p740_p6 }
  0xd1   : > { %p467_p0 = pneg %p466_p13 }
  0xd3   : > { %658 = dma.done.wait (%p467_p0), %s319_s18, 256  }
  0xd4   : > { %660 = vsyncadd (%p467_p0), %s319_s18, 4294967040  ;;  %p17_p3 = scmp.ge.s32.totalorder %s764_s8, 4   ;;  %s863_s12 = smov %s667_s13 }
  0xd5   : > { %s864_s13 = smov %s671_s14  ;;  %s865_s14 = smov %s773_s11 }
  0xd6   : > { %s866_s15 = smov %s764_s8  ;;  %19 = sbr.rel (!%p17_p3) target bundleno = 6 (0x6), region = 85 }
  0xdb   :  { %325 = vsyncpa [#allocation3], 1 }
  0xdc   :  { %327 = vsyncpa [#allocation3 + $0x1], 1 }
  0xdd   :  { %328 = vsyncpa [#allocation6], 1 }
  0xde   :  { %329 = vsyncpa [#allocation4], 1 }
  0xdf   :  { %331 = vsyncpa [#allocation4 + $0x1], 1 }

</bundles_post_ra>
